<compile_context>
chip_gen: v7x
topology: tpu7x:2x2x1
jax: 0.10.0
libtpu: 0.0.40
codegen_flags: <defaults>
</compile_context>

<pallas_src>
import copy
import functools

import jax
import jax.numpy as jnp
from jax.experimental import pallas as pl
from jax.experimental.pallas import tpu as pltpu


def _round_up(x, m):
    return ((x + m - 1) // m) * m


def _mlp_kernel(x_ref,
                w1_ref, b1_ref,
                w2_ref, b2_ref,
                w3_ref, b3_ref,
                w4_ref, b4_ref,
                o_ref):
    """Fused forward for one (net, batch-tile) grid point.

    Matmuls accumulate in f32 on the MXU; bias-add + ReLU stay in f32 on the
    VPU (v5e has no bf16 VPU path). Activations are cast to the weight dtype
    only at each matmul input, so bf16 weights are supported transparently.
    """
    wdt = w1_ref.dtype

    h = jnp.dot(x_ref[...].astype(wdt), w1_ref[...],
                preferred_element_type=jnp.float32)
    h = jnp.maximum(h + b1_ref[...], 0.0)

    h = jnp.dot(h.astype(wdt), w2_ref[...],
                preferred_element_type=jnp.float32)
    h = jnp.maximum(h + b2_ref[...], 0.0)

    h = jnp.dot(h.astype(wdt), w3_ref[...],
                preferred_element_type=jnp.float32)
    h = jnp.maximum(h + b3_ref[...], 0.0)

    h = jnp.dot(h.astype(wdt), w4_ref[...],
                preferred_element_type=jnp.float32)
    o_ref[...] = (h + b4_ref[...]).astype(o_ref.dtype)


@functools.partial(jax.jit, static_argnames=("action_space",))
def _mlp_forward_stacked(x, stacked_params, *, action_space):
    """Run N stacked networks (leading axis) over a batch in one pallas_call.

    stacked_params = (w1, b1, ..., w4, b4), each with a leading net axis.
    Returns [N, B, action_space].
    """
    w1, b1, w2, b2, w3, b3, w4, b4 = stacked_params
    n_nets = w1.shape[0]
    B, d_in = x.shape
    d1, d2, d3, d_out = w1.shape[-1], w2.shape[-1], w3.shape[-1], w4.shape[-1]

    # Large batch tiles amortize the ~0.35us/step overhead; weights/biases are
    # DMA'd once per network and stay VMEM-resident across all batch tiles
    # (their block index does not depend on the batch grid index).
    tile_b = min(512, _round_up(B, 8))
    b_pad = _round_up(B, tile_b)
    if b_pad != B:
        x = jnp.pad(x, ((0, b_pad - B), (0, 0)))
    n_btiles = b_pad // tile_b

    flops = 2 * n_nets * b_pad * (d_in * d1 + d1 * d2 + d2 * d3 + d3 * d_out)
    bytes_accessed = (
        x.size * x.dtype.itemsize
        + sum(a.size * a.dtype.itemsize for a in stacked_params)
        + n_nets * b_pad * d_out * x.dtype.itemsize)

    def net_resident(shape):
        # Block index depends only on the network axis -> loaded once per net,
        # resident in VMEM across the (inner, fastest) batch-tile axis.
        return pl.BlockSpec((None,) + tuple(shape),
                            lambda n, i, _nd=len(shape): (n,) + (0,) * _nd)

    out = pl.pallas_call(
        _mlp_kernel,
        out_shape=jax.ShapeDtypeStruct((n_nets, b_pad, d_out), x.dtype),
        grid=(n_nets, n_btiles),  # batch innermost => weights re-DMA'd only on net change
        in_specs=[
            pl.BlockSpec((tile_b, d_in), lambda n, i: (i, 0)),
            net_resident((d_in, d1)), net_resident((1, d1)),
            net_resident((d1, d2)), net_resident((1, d2)),
            net_resident((d2, d3)), net_resident((1, d3)),
            net_resident((d3, d_out)), net_resident((1, d_out)),
        ],
        out_specs=pl.BlockSpec((None, tile_b, d_out), lambda n, i: (n, i, 0)),
        compiler_params=pltpu.CompilerParams(
            dimension_semantics=("parallel", "parallel")),
        cost_estimate=pl.CostEstimate(
            flops=flops, transcendentals=0, bytes_accessed=bytes_accessed),
    )(x, w1, b1, w2, b2, w3, b3, w4, b4)

    # Drop batch padding and the zero-padded output columns (padding is exact).
    return out[:, :B, :action_space]


class BigMLP:
    """JAX/Pallas port of the PyTorch BigMLP (online + frozen target nets)."""

    def __init__(self, input_shape, action_space, key=None,
                 param_dtype=jnp.float32, **kwargs):
        # param_dtype=jnp.bfloat16 is recommended on v6e/v7x (bf16-native MXU,
        # half the weight-DMA bytes); accumulation stays f32 in the kernel.
        if key is None:
            key = jax.random.PRNGKey(0)
        self.input_shape = int(input_shape)
        self.action_space = int(action_space)

        dims = [self.input_shape, 512, 256, 64, self.action_space]
        raw = []
        for i in range(4):
            key, wk, bk = jax.random.split(key, 3)
            bound = 1.0 / float(dims[i]) ** 0.5
            # PyTorch nn.Linear init: U(-1/sqrt(fan_in), 1/sqrt(fan_in));
            # stored here as [in, out] (== applying W.T in y = x @ W.T + b).
            w = jax.random.uniform(wk, (dims[i], dims[i + 1]),
                                   minval=-bound, maxval=bound,
                                   dtype=jnp.float32)
            b = jax.random.uniform(bk, (1, dims[i + 1]),
                                   minval=-bound, maxval=bound,
                                   dtype=jnp.float32)
            raw.append((w, b))
        (w1, b1), (w2, b2), (w3, b3), (w4, b4) = raw

        # Zero-pad layer 3 (64 -> 128 units) and layer 4 (64 -> 128 rows,
        # action_space -> 128 cols). Exact: padded hidden units are relu(0)=0
        # and feed zero rows of W4; padded output cols are sliced off in the
        # wrapper. Gives lane-dense multiples of 128 for MXU N and unmasked
        # output stores.
        h3p = 128
        outp = _round_up(max(self.action_space, 128), 128)
        w3 = jnp.pad(w3, ((0, 0), (0, h3p - w3.shape[1])))
        b3 = jnp.pad(b3, ((0, 0), (0, h3p - b3.shape[1])))
        w4 = jnp.pad(w4, ((0, h3p - w4.shape[0]), (0, outp - w4.shape[1])))
        b4 = jnp.pad(b4, ((0, 0), (0, outp - b4.shape[1])))

        w1, w2, w3, w4 = (w.astype(param_dtype) for w in (w1, w2, w3, w4))
        self.online = (w1, b1, w2, b2, w3, b3, w4, b4)
        # target = frozen deep copy of online (no grads tracked here anyway)
        self.target = copy.deepcopy(self.online)

        # Pre-stacked parameter pytrees (leading net axis) so forward() does
        # no per-call restacking; "both" runs online+target in ONE pallas_call.
        online_s = tuple(a[None] for a in self.online)
        target_s = tuple(a[None] for a in self.target)
        self._stacked = {
            "online": online_s,
            "target": target_s,
            "both": tuple(jnp.concatenate([o, t], axis=0)
                          for o, t in zip(online_s, target_s)),
        }

    def forward(self, x, model):
        if model == "online":
            return _mlp_forward_stacked(
                x, self._stacked["online"], action_space=self.action_space)[0]
        elif model == "target":
            return _mlp_forward_stacked(
                x, self._stacked["target"], action_space=self.action_space)[0]

    def forward_both(self, x):
        """Online and target forward in a single fused pallas_call."""
        out = _mlp_forward_stacked(
            x, self._stacked["both"], action_space=self.action_space)
        return out[0], out[1]

    __call__ = forward


def _reference(x, params):
    """Pure-jnp reference using the same (padded) parameters."""
    w1, b1, w2, b2, w3, b3, w4, b4 = (a.astype(jnp.float32) for a in params)
    h = jnp.maximum(x @ w1 + b1, 0.0)
    h = jnp.maximum(h @ w2 + b2, 0.0)
    h = jnp.maximum(h @ w3 + b3, 0.0)
    return h @ w4 + b4


if __name__ == "__main__":
    key = jax.random.PRNGKey(0)
    key, xk, pk = jax.random.split(key, 3)

    batch = 8
    input_shape = 32
    action_space = 8

    net = BigMLP(input_shape, action_space, key=pk)
    x = jax.random.normal(xk, (batch, input_shape), dtype=jnp.float32)

    out_online = net(x, "online")
    out_target = net(x, "target")
    both_on, both_tg = net.forward_both(x)
    jax.block_until_ready((out_online, out_target, both_on, both_tg))

    ref = _reference(x, net.online)[:, :action_space]
    assert out_online.shape == (batch, action_space)
    assert jnp.allclose(out_online, ref, atol=1e-4, rtol=1e-4)
    assert jnp.allclose(out_target, out_online, atol=1e-6)
    assert jnp.allclose(both_on, out_online, atol=1e-6)
    assert jnp.allclose(both_tg, out_target, atol=1e-6)

    # Larger, non-multiple-of-tile batch exercises the batch grid + padding.
    key, xk2 = jax.random.split(key)
    x2 = jax.random.normal(xk2, (1000, input_shape), dtype=jnp.float32)
    out2 = net(x2, "online")
    jax.block_until_ready(out2)
    ref2 = _reference(x2, net.online)[:, :action_space]
    assert out2.shape == (1000, action_space)
    assert jnp.allclose(out2, ref2, atol=1e-4, rtol=1e-4)

    print("KERNEL_OK")
</pallas_src>

<mosaic_0001>
module attributes {stable_mosaic.version = 11 : i64} {
  func.func @_mlp_kernel(%arg0: i32, %arg1: i32, %arg2: memref<8x32xf32, #tpu.memory_space<vmem>>, %arg3: memref<1x32x512xf32, #tpu.memory_space<vmem>>, %arg4: memref<1x1x512xf32, #tpu.memory_space<vmem>>, %arg5: memref<1x512x256xf32, #tpu.memory_space<vmem>>, %arg6: memref<1x1x256xf32, #tpu.memory_space<vmem>>, %arg7: memref<1x256x128xf32, #tpu.memory_space<vmem>>, %arg8: memref<1x1x128xf32, #tpu.memory_space<vmem>>, %arg9: memref<1x128x128xf32, #tpu.memory_space<vmem>>, %arg10: memref<1x1x128xf32, #tpu.memory_space<vmem>>, %arg11: memref<1x8x128xf32, #tpu.memory_space<vmem>>) attributes {dimension_semantics = [#tpu.dimension_semantics<parallel>, #tpu.dimension_semantics<parallel>], iteration_bounds = array<i64: 1, 1>, scalar_prefetch = 0 : i64, scratch_operands = 0 : i64, tpu.core_type = #tpu.core_type<tc>, window_params = [{transform_indices = @transform_0, window_bounds = array<i64: 8, 32>}, {transform_indices = @transform_1, window_bounds = array<i64: 1, 32, 512>}, {transform_indices = @transform_2, window_bounds = array<i64: 1, 1, 512>}, {transform_indices = @transform_3, window_bounds = array<i64: 1, 512, 256>}, {transform_indices = @transform_4, window_bounds = array<i64: 1, 1, 256>}, {transform_indices = @transform_5, window_bounds = array<i64: 1, 256, 128>}, {transform_indices = @transform_6, window_bounds = array<i64: 1, 1, 128>}, {transform_indices = @transform_7, window_bounds = array<i64: 1, 128, 128>}, {transform_indices = @transform_8, window_bounds = array<i64: 1, 1, 128>}, {transform_indices = @transform_9, window_bounds = array<i64: 1, 8, 128>}]} {
    %c0 = arith.constant 0 : index
    %c0_0 = arith.constant 0 : index
    %0 = vector.load %arg2[%c0, %c0_0] : memref<8x32xf32, #tpu.memory_space<vmem>>, vector<8x32xf32>
    %c0_1 = arith.constant 0 : index
    %c0_2 = arith.constant 0 : index
    %c0_3 = arith.constant 0 : index
    %1 = vector.load %arg3[%c0_1, %c0_2, %c0_3] : memref<1x32x512xf32, #tpu.memory_space<vmem>>, vector<1x32x512xf32>
    %2 = vector.shape_cast %1 : vector<1x32x512xf32> to vector<32x512xf32>
    %cst = arith.constant dense<0.000000e+00> : vector<8x512xf32>
    %3 = tpu.matmul %0, %2, %cst {dimension_numbers = #tpu.dot_dimension_numbers<[1], [0], [0], [1], [0, 0, 1, 1], [], []>} : vector<8x32xf32>, vector<32x512xf32>, vector<8x512xf32> -> vector<8x512xf32>
    %c0_4 = arith.constant 0 : index
    %c0_5 = arith.constant 0 : index
    %c0_6 = arith.constant 0 : index
    %4 = vector.load %arg4[%c0_4, %c0_5, %c0_6] : memref<1x1x512xf32, #tpu.memory_space<vmem>>, vector<1x1x512xf32>
    %5 = vector.shape_cast %4 : vector<1x1x512xf32> to vector<1x512xf32>
    %6 = vector.broadcast %5 : vector<1x512xf32> to vector<8x512xf32>
    %7 = arith.addf %3, %6 : vector<8x512xf32>
    %cst_7 = arith.constant 0.000000e+00 : f32
    %8 = vector.broadcast %cst_7 : f32 to vector<8x512xf32>
    %9 = arith.maximumf %7, %8 : vector<8x512xf32>
    %c0_8 = arith.constant 0 : index
    %c0_9 = arith.constant 0 : index
    %c0_10 = arith.constant 0 : index
    %10 = vector.load %arg5[%c0_8, %c0_9, %c0_10] : memref<1x512x256xf32, #tpu.memory_space<vmem>>, vector<1x512x256xf32>
    %11 = vector.shape_cast %10 : vector<1x512x256xf32> to vector<512x256xf32>
    %cst_11 = arith.constant dense<0.000000e+00> : vector<8x256xf32>
    %12 = tpu.matmul %9, %11, %cst_11 {dimension_numbers = #tpu.dot_dimension_numbers<[1], [0], [0], [1], [0, 0, 1, 1], [], []>} : vector<8x512xf32>, vector<512x256xf32>, vector<8x256xf32> -> vector<8x256xf32>
    %c0_12 = arith.constant 0 : index
    %c0_13 = arith.constant 0 : index
    %c0_14 = arith.constant 0 : index
    %13 = vector.load %arg6[%c0_12, %c0_13, %c0_14] : memref<1x1x256xf32, #tpu.memory_space<vmem>>, vector<1x1x256xf32>
    %14 = vector.shape_cast %13 : vector<1x1x256xf32> to vector<1x256xf32>
    %15 = vector.broadcast %14 : vector<1x256xf32> to vector<8x256xf32>
    %16 = arith.addf %12, %15 : vector<8x256xf32>
    %cst_15 = arith.constant 0.000000e+00 : f32
    %17 = vector.broadcast %cst_15 : f32 to vector<8x256xf32>
    %18 = arith.maximumf %16, %17 : vector<8x256xf32>
    %c0_16 = arith.constant 0 : index
    %c0_17 = arith.constant 0 : index
    %c0_18 = arith.constant 0 : index
    %19 = vector.load %arg7[%c0_16, %c0_17, %c0_18] : memref<1x256x128xf32, #tpu.memory_space<vmem>>, vector<1x256x128xf32>
    %20 = vector.shape_cast %19 : vector<1x256x128xf32> to vector<256x128xf32>
    %cst_19 = arith.constant dense<0.000000e+00> : vector<8x128xf32>
    %21 = tpu.matmul %18, %20, %cst_19 {dimension_numbers = #tpu.dot_dimension_numbers<[1], [0], [0], [1], [0, 0, 1, 1], [], []>} : vector<8x256xf32>, vector<256x128xf32>, vector<8x128xf32> -> vector<8x128xf32>
    %c0_20 = arith.constant 0 : index
    %c0_21 = arith.constant 0 : index
    %c0_22 = arith.constant 0 : index
    %22 = vector.load %arg8[%c0_20, %c0_21, %c0_22] : memref<1x1x128xf32, #tpu.memory_space<vmem>>, vector<1x1x128xf32>
    %23 = vector.shape_cast %22 : vector<1x1x128xf32> to vector<1x128xf32>
    %24 = vector.broadcast %23 : vector<1x128xf32> to vector<8x128xf32>
    %25 = arith.addf %21, %24 : vector<8x128xf32>
    %cst_23 = arith.constant 0.000000e+00 : f32
    %26 = vector.broadcast %cst_23 : f32 to vector<8x128xf32>
    %27 = arith.maximumf %25, %26 : vector<8x128xf32>
    %c0_24 = arith.constant 0 : index
    %c0_25 = arith.constant 0 : index
    %c0_26 = arith.constant 0 : index
    %28 = vector.load %arg9[%c0_24, %c0_25, %c0_26] : memref<1x128x128xf32, #tpu.memory_space<vmem>>, vector<1x128x128xf32>
    %29 = vector.shape_cast %28 : vector<1x128x128xf32> to vector<128x128xf32>
    %cst_27 = arith.constant dense<0.000000e+00> : vector<8x128xf32>
    %30 = tpu.matmul %27, %29, %cst_27 {dimension_numbers = #tpu.dot_dimension_numbers<[1], [0], [0], [1], [0, 0, 1, 1], [], []>} : vector<8x128xf32>, vector<128x128xf32>, vector<8x128xf32> -> vector<8x128xf32>
    %c0_28 = arith.constant 0 : index
    %c0_29 = arith.constant 0 : index
    %c0_30 = arith.constant 0 : index
    %31 = vector.load %arg10[%c0_28, %c0_29, %c0_30] : memref<1x1x128xf32, #tpu.memory_space<vmem>>, vector<1x1x128xf32>
    %32 = vector.shape_cast %31 : vector<1x1x128xf32> to vector<1x128xf32>
    %33 = vector.broadcast %32 : vector<1x128xf32> to vector<8x128xf32>
    %34 = arith.addf %30, %33 : vector<8x128xf32>
    %c0_31 = arith.constant 0 : index
    %c0_32 = arith.constant 0 : index
    %c0_33 = arith.constant 0 : index
    %35 = vector.load %arg11[%c0_31, %c0_32, %c0_33] : memref<1x8x128xf32, #tpu.memory_space<vmem>>, vector<1x8x128xf32>
    %36 = vector.shape_cast %35 : vector<1x8x128xf32> to vector<8x128xf32>
    %37 = vector.shape_cast %34 : vector<8x128xf32> to vector<1x8x128xf32>
    tpu.vector_store %arg11[%c0_31, %c0_32, %c0_33], %37 {strides = array<i32>} : memref<1x8x128xf32, #tpu.memory_space<vmem>>, vector<1x8x128xf32>,
    return
  }
  func.func @transform_0(%arg0: i32, %arg1: i32) -> (i32, i32) {
    %c0_i32 = arith.constant 0 : i32
    %c0_i32_0 = arith.constant 0 : i32
    return %arg1, %c0_i32 : i32, i32
  }
  func.func @transform_1(%arg0: i32, %arg1: i32) -> (i32, i32, i32) {
    %c0_i32 = arith.constant 0 : i32
    %c0_i32_0 = arith.constant 0 : i32
    %c0_i32_1 = arith.constant 0 : i32
    return %arg0, %c0_i32, %c0_i32_0 : i32, i32, i32
  }
  func.func @transform_2(%arg0: i32, %arg1: i32) -> (i32, i32, i32) {
    %c0_i32 = arith.constant 0 : i32
    %c0_i32_0 = arith.constant 0 : i32
    %c0_i32_1 = arith.constant 0 : i32
    return %arg0, %c0_i32, %c0_i32_0 : i32, i32, i32
  }
  func.func @transform_3(%arg0: i32, %arg1: i32) -> (i32, i32, i32) {
    %c0_i32 = arith.constant 0 : i32
    %c0_i32_0 = arith.constant 0 : i32
    %c0_i32_1 = arith.constant 0 : i32
    return %arg0, %c0_i32, %c0_i32_0 : i32, i32, i32
  }
  func.func @transform_4(%arg0: i32, %arg1: i32) -> (i32, i32, i32) {
    %c0_i32 = arith.constant 0 : i32
    %c0_i32_0 = arith.constant 0 : i32
    %c0_i32_1 = arith.constant 0 : i32
    return %arg0, %c0_i32, %c0_i32_0 : i32, i32, i32
  }
  func.func @transform_5(%arg0: i32, %arg1: i32) -> (i32, i32, i32) {
    %c0_i32 = arith.constant 0 : i32
    %c0_i32_0 = arith.constant 0 : i32
    %c0_i32_1 = arith.constant 0 : i32
    return %arg0, %c0_i32, %c0_i32_0 : i32, i32, i32
  }
  func.func @transform_6(%arg0: i32, %arg1: i32) -> (i32, i32, i32) {
    %c0_i32 = arith.constant 0 : i32
    %c0_i32_0 = arith.constant 0 : i32
    %c0_i32_1 = arith.constant 0 : i32
    return %arg0, %c0_i32, %c0_i32_0 : i32, i32, i32
  }
  func.func @transform_7(%arg0: i32, %arg1: i32) -> (i32, i32, i32) {
    %c0_i32 = arith.constant 0 : i32
    %c0_i32_0 = arith.constant 0 : i32
    %c0_i32_1 = arith.constant 0 : i32
    return %arg0, %c0_i32, %c0_i32_0 : i32, i32, i32
  }
  func.func @transform_8(%arg0: i32, %arg1: i32) -> (i32, i32, i32) {
    %c0_i32 = arith.constant 0 : i32
    %c0_i32_0 = arith.constant 0 : i32
    %c0_i32_1 = arith.constant 0 : i32
    return %arg0, %c0_i32, %c0_i32_0 : i32, i32, i32
  }
  func.func @transform_9(%arg0: i32, %arg1: i32) -> (i32, i32, i32) {
    %c0_i32 = arith.constant 0 : i32
    %c0_i32_0 = arith.constant 0 : i32
    return %arg0, %arg1, %c0_i32 : i32, i32, i32
  }
}

</mosaic_0001>

<bundles_post_ra>
// kernel: _mlp_forward_stacked.1
= control target key start
LH: loop header
LB: loop body
LE: loop exit
PB: predicated region body
PF: predicated region fallthrough
CT: control target
= control target key end

     0   :  { %14 = vsyncpa [#allocation3], 0  ;;  %s1433_s0 = inlined_call_operand.hbm [shape: f32[8,32], index: 0, kind: input, shape index: {}]   ;;  %s1434_s1 = inlined_call_operand.hbm [shape: f32[1,32,512], index: 1, kind: input, shape index: {}]   ;;  %s1435_s2 = inlined_call_operand.vmem [shape: f32[1,1,512], index: 2, kind: input, shape index: {}]   ;;  %s1436_s3 = inlined_call_operand.hbm [shape: f32[1,512,256], index: 3, kind: input, shape index: {}]   ;;  %s1437_s4 = inlined_call_operand.vmem [shape: f32[1,1,256], index: 4, kind: input, shape index: {}]   ;;  %s1438_s5 = inlined_call_operand.hbm [shape: f32[1,256,128], index: 5, kind: input, shape index: {}]   ;;  %s1439_s6 = inlined_call_operand.vmem [shape: f32[1,1,128], index: 6, kind: input, shape index: {}]   ;;  %s1440_s7 = inlined_call_operand.hbm [shape: f32[1,128,128], index: 7, kind: input, shape index: {}]   ;;  %s1441_s8 = inlined_call_operand.vmem [shape: f32[1,1,128], index: 8, kind: input, shape index: {}]   ;;  %s1442_s9 = inlined_call_operand.hbm [shape: f32[1,8,128], index: 9, kind: output, shape index: {}]  }
   0x1   :  { %15 = vsyncpa [#allocation6], 0 }
   0x2   :  { %16 = vsyncpa [#allocation9], 0 }
   0x3   :  { %17 = vsyncpa [#allocation4], 0  ;;  %s1243_s30 = smov [#allocation5]   ;;  %s1103_s13 = scalar_lea.hbm %s1434_s1, 2048 }
   0x4   :  { %s33_s10 = sshll.u32 %s1243_s30, 4  ;;  %p1104_p0 = scmp.ne.s32.totalorder %s1434_s1, %s1103_s13  ;;  %s34_s10 = int_to_ptr.vmem [resolvable:$true] %s33_s10 }
   0x5   :  { %p1107_p1 = scmp.lt.u32.totalorder %s1103_s13, %s1434_s1 }
   0x7   :  { %p1109_p2 = pnand %p1107_p1, %p1104_p0 }
   0x9   :  { %1112 = shalt.err (!%p1109_p2)
}
   0xa   :  { %s1113_s18 = scalar_lea.vmem %s34_s10, 2048  ;;  %p1118_p4 = scmp.lt.s32.totalorder %s34_s10, %s34_s10 }
   0xb   :  { %p1114_p3 = scmp.ne.s32.totalorder %s34_s10, %s1113_s18  ;;  %p1119_p5 = scmp.lt.s32.totalorder %s1113_s18, %s1113_s18 }
   0xd   :  { %p1120_p6 = por %p1119_p5, %p1118_p4 }
   0xf   :  { %p1121_p7 = pnand %p1120_p6, %p1114_p3 }
  0x11   :  { %1124 = shalt.err (!%p1121_p7)
}
  0x12   :  { %s1244_s19 = smov 512   ;;  %s1245_s20 = smov 32  }
  0x13   :  { %39 = dma.hbm_to_vmem [thread:$0]  %s1434_s1, 2048, %s34_s10, [#allocation6], %s1244_s19, %s1244_s19, %s1245_s20  }
  0x14   :  { %s1246_s23 = smov [#allocation8]   ;;  %s1125_s27 = scalar_lea.hbm %s1438_s5, 4096 }
  0x15   :  { %s61_s24 = sshll.u32 %s1246_s23, 4  ;;  %p1126_p8 = scmp.ne.s32.totalorder %s1438_s5, %s1125_s27  ;;  %s62_s24 = int_to_ptr.vmem [resolvable:$true] %s61_s24 }
  0x16   :  { %p1129_p9 = scmp.lt.u32.totalorder %s1125_s27, %s1438_s5 }
  0x18   :  { %p1131_p10 = pnand %p1129_p9, %p1126_p8 }
  0x1a   :  { %1134 = shalt.err (!%p1131_p10)
}
  0x1b   :  { %s1135_s12 = scalar_lea.vmem %s62_s24, 4096  ;;  %p1140_p12 = scmp.lt.s32.totalorder %s62_s24, %s62_s24 }
  0x1c   :  { %p1136_p11 = scmp.ne.s32.totalorder %s62_s24, %s1135_s12  ;;  %p1141_p13 = scmp.lt.s32.totalorder %s1135_s12, %s1135_s12 }
  0x1e   :  { %p1142_p0 = por %p1141_p13, %p1140_p12 }
  0x20   :  { %p1143_p1 = pnand %p1142_p0, %p1136_p11 }
  0x22   :  { %1146 = shalt.err (!%p1143_p1)
}
  0x23   :  { %s1247_s1 = smov 128   ;;  %s1248_s10 = smov 8  }
  0x24   :  { %67 = dma.hbm_to_vmem [thread:$0]  %s1438_s5, 4096, %s62_s24, [#allocation9], %s1247_s1, %s1247_s1, %s1248_s10  }
  0x25   :  { %s1249_s15 = smov [#allocation2]   ;;  %s1250_s17 = smov [#allocation7]  }
  0x26   :  { %s24_s16 = sshll.u32 %s1249_s15, 4  ;;  %s47_s18 = sshll.u32 %s1250_s17, 4  ;;  %s25_s16 = int_to_ptr.vmem [resolvable:$true] %s24_s16  ;;  %s1335_s18 = int_to_ptr.vmem [resolvable:$true] %s47_s18 }
  0x27   :  { %s1147_s21 = scalar_lea.hbm %s1433_s0, 128 }
  0x28   :  { %p1148_p2 = scmp.ne.s32.totalorder %s1433_s0, %s1147_s21  ;;  %p1151_p3 = scmp.lt.u32.totalorder %s1147_s21, %s1433_s0 }
  0x2a   :  { %p1153_p4 = pnand %p1151_p3, %p1148_p2 }
  0x2c   :  { %1156 = shalt.err (!%p1153_p4)
}
  0x2d   :  { %s1157_s5 = scalar_lea.vmem %s25_s16, 128  ;;  %p1162_p6 = scmp.lt.s32.totalorder %s25_s16, %s25_s16 }
  0x2e   :  { %p1158_p5 = scmp.ne.s32.totalorder %s25_s16, %s1157_s5  ;;  %p1163_p7 = scmp.lt.s32.totalorder %s1157_s5, %s1157_s5 }
  0x30   :  { %p1164_p8 = por %p1163_p7, %p1162_p6 }
  0x32   :  { %p1165_p9 = pnand %p1164_p8, %p1158_p5 }
  0x34   :  { %1168 = shalt.err (!%p1165_p9)
}
  0x35   :  { %27 = dma.hbm_to_vmem [thread:$0]  %s1433_s0, 128, %s25_s16, [#allocation3]  }
  0x36   :  { %s1169_s30 = scalar_lea.hbm %s1436_s3, 16384 }
  0x37   :  { %p1170_p10 = scmp.ne.s32.totalorder %s1436_s3, %s1169_s30  ;;  %p1173_p11 = scmp.lt.u32.totalorder %s1169_s30, %s1436_s3 }
  0x39   :  { %p1175_p12 = pnand %p1173_p11, %p1170_p10 }
  0x3b   :  { %1178 = shalt.err (!%p1175_p12)
}
  0x3c   :  { %s1179_s15 = scalar_lea.vmem %s1335_s18, 16384  ;;  %p1184_p0 = scmp.lt.s32.totalorder %s1335_s18, %s1335_s18 }
  0x3d   :  { %p1180_p13 = scmp.ne.s32.totalorder %s1335_s18, %s1179_s15  ;;  %p1185_p1 = scmp.lt.s32.totalorder %s1179_s15, %s1179_s15 }
  0x3f   :  { %p1186_p2 = por %p1185_p1, %p1184_p0 }
  0x41   :  { %p1187_p3 = pnand %p1186_p2, %p1180_p13 }
  0x43   :  { %1190 = shalt.err (!%p1187_p3)
}
  0x44   :  { %s1251_s0 = smov 256   ;;  %s1252_s16 = smov 16  }
  0x45   :  { %53 = dma.hbm_to_vmem [thread:$0]  %s1436_s3, 16384, %s1335_s18, [#allocation6], %s1251_s0, %s1251_s0, %s1252_s16  }
  0x46   :  { %s1253_s20 = smov [#allocation10]   ;;  %s1191_s25 = scalar_lea.hbm %s1440_s7, 2048 }
  0x47   :  { %s75_s21 = sshll.u32 %s1253_s20, 4  ;;  %p1192_p4 = scmp.ne.s32.totalorder %s1440_s7, %s1191_s25  ;;  %s76_s21 = int_to_ptr.vmem [resolvable:$true] %s75_s21 }
  0x48   :  { %p1195_p5 = scmp.lt.u32.totalorder %s1191_s25, %s1440_s7 }
  0x4a   :  { %p1197_p6 = pnand %p1195_p5, %p1192_p4 }
  0x4c   :  { %1200 = shalt.err (!%p1197_p6)
}
  0x4d   :  { %s1201_s28 = scalar_lea.vmem %s76_s21, 2048  ;;  %p1206_p8 = scmp.lt.s32.totalorder %s76_s21, %s76_s21 }
  0x4e   :  { %p1202_p7 = scmp.ne.s32.totalorder %s76_s21, %s1201_s28  ;;  %p1207_p9 = scmp.lt.s32.totalorder %s1201_s28, %s1201_s28 }
  0x50   :  { %p1208_p10 = por %p1207_p9, %p1206_p8 }
  0x52   :  { %p1209_p11 = pnand %p1208_p10, %p1202_p7 }
  0x54   :  { %1212 = shalt.err (!%p1209_p11)
}
  0x55   :  { %81 = dma.hbm_to_vmem [thread:$0]  %s1440_s7, 2048, %s76_s21, [#allocation9], %s1247_s1, %s1247_s1, %s1248_s10  }
  0x56   :  { %1235 = dma.done.wait [#allocation3], 128  }
  0x57   :  { %1236 = vsyncadd [#allocation3], 4294967168 }
  0x58   :  { %1237 = dma.done.wait [#allocation6], 18432  }
  0x59   :  { %1238 = vsyncadd [#allocation6], 4294948864 }
  0x5a   :  { %1239 = dma.done.wait [#allocation9], 6144  }
  0x5b   :  { %1240 = vsyncadd [#allocation9], 4294961152  ;;  %v1254_v0 = vmov 0.0   ;;  %v101_v1 = vld [vmem:[#allocation5 + $0x8] sm:$0xff]  ;;  %v100_v3 = vld [vmem:[#allocation5] sm:$0xff]  ;;  %vm138_vm0 = vcmask 261120  }
  0x5c   :  { %206 = vmatprep.mubr.f32.mxu1 %v1254_v0  ;;  %v105_v2 = vld [vmem:[#allocation5 + $0x28] sm:$0xff]  ;;  %v104_v5 = vld [vmem:[#allocation5 + $0x20] sm:$0xff]  ;;  %v103_v12 = vld [vmem:[#allocation5 + $0x18] sm:$0xff]  ;;  %vm1256_vm1 = vmmov 0   ;;  %s1257_s12 = smov [#allocation11]  }
  0x5d   :  { %v884_v4 = vpack.c.bf16 %v105_v2, %v101_v1  ;;  %v109_v6 = vld [vmem:[#allocation5 + $0x48] sm:$0xff]  ;;  %v886_v8 = vpack.c.bf16 %v104_v5, %v100_v3  ;;  %v108_v10 = vld [vmem:[#allocation5 + $0x40] sm:$0xff]  ;;  %v107_v13 = vld [vmem:[#allocation5 + $0x38] sm:$0xff]  ;;  %s782_s13 = sshll.u32 %s1257_s12, 4  ;;  %s783_s13 = int_to_ptr.vmem [resolvable:$true] %s782_s13 }
  0x5e   :  { %v113_v7 = vld [vmem:[#allocation5 + $0x68] sm:$0xff]  ;;  %v112_v11 = vld [vmem:[#allocation5 + $0x60] sm:$0xff]  ;;  %v102_v15 = vld [vmem:[#allocation5 + $0x10] sm:$0xff]  ;;  %v892_v17 = vpack.c.bf16 %v107_v13, %v103_v12  ;;  %s1213_s14 = scalar_lea.vmem %s783_s13, 128  ;;  %p1218_p13 = scmp.lt.s32.totalorder %s783_s13, %s783_s13 }
  0x5f   :  { %v888_v9 = vpack.c.bf16 %v113_v7, %v109_v6  ;;  %885 = vmatprep.subr.bf16.mxu1 %v884_v4  ;;  %v890_v14 = vpack.c.bf16 %v112_v11, %v108_v10  ;;  %v106_v16 = vld [vmem:[#allocation5 + $0x30] sm:$0xff]  ;;  %v111_v18 = vld [vmem:[#allocation5 + $0x58] sm:$0xff]  ;;  %v289_v20 = vld [vmem:[#allocation7 + $0x8] sm:$0xff]  ;;  %p1214_p12 = scmp.ne.s32.totalorder %s783_s13, %s1213_s14  ;;  %p1219_p0 = scmp.lt.s32.totalorder %s1213_s14, %s1213_s14 }
  0x60   :  { %887 = vmatpush1.bf16.msra.mxu1 %v886_v8  ;;  %v115_v19 = vld [vmem:[#allocation5 + $0x78] sm:$0xff]  ;;  %v288_v23 = vld [vmem:[#allocation7] sm:$0xff]  ;;  %v290_v24 = vld [vmem:[#allocation7 + $0x10] sm:$0xff]  ;;  %v894_v30 = vpack.c.bf16 %v106_v16, %v102_v15 }
  0x61   :  { %889 = vmatprep.subr.bf16.mxu1 %v888_v9  ;;  %v99_v21 = vld [vmem:[#allocation2] sm:$0xff]  ;;  %v902_v26 = vpack.c.bf16 %v290_v24, %v288_v23  ;;  %v293_v27 = vld [vmem:[#allocation7 + $0x28] sm:$0xff]  ;;  %v292_v29 = vld [vmem:[#allocation7 + $0x20] sm:$0xff]  ;;  %v896_v35 = vpack.c.bf16 %v115_v19, %v111_v18  ;;  %p1220_p1 = por %p1219_p0, %p1218_p13 }
  0x62   :  { %v291_v22 = vld [vmem:[#allocation7 + $0x18] sm:$0xff]  ;;  %v294_v32 = vld [vmem:[#allocation7 + $0x30] sm:$0xff]  ;;  %v297_v33 = vld [vmem:[#allocation7 + $0x48] sm:$0xff] }
  0x63   :  { %v900_v25 = vpack.c.bf16 %v291_v22, %v289_v20  ;;  %v295_v28 = vld [vmem:[#allocation7 + $0x38] sm:$0xff]  ;;  %v110_v36 = vld [vmem:[#allocation5 + $0x50] sm:$0xff]  ;;  %v906_v38 = vpack.c.bf16 %v294_v32, %v292_v29  ;;  %v296_v40 = vld [vmem:[#allocation7 + $0x40] sm:$0xff]  ;;  %p1221_p2 = pnand %p1220_p1, %p1214_p12 }
  0x64   :  { %891 = vmatpush1.bf16.msra.mxu1 %v890_v14  ;;  %v904_v31 = vpack.c.bf16 %v295_v28, %v293_v27  ;;  %v299_v34 = vld [vmem:[#allocation7 + $0x58] sm:$0xff]  ;;  %v114_v37 = vld [vmem:[#allocation5 + $0x70] sm:$0xff]  ;;  %v301_v43 = vld [vmem:[#allocation7 + $0x68] sm:$0xff] }
  0x65   :  { %893 = vmatprep.subr.bf16.mxu1 %v892_v17  ;;  %901 = vmatprep.subr.bf16.mxu0 %v900_v25  ;;  %v908_v39 = vpack.c.bf16 %v299_v34, %v297_v33  ;;  %v298_v41 = vld [vmem:[#allocation7 + $0x50] sm:$0xff]  ;;  %v898_v42 = vpack.c.bf16 %v114_v37, %v110_v36  ;;  %v303_v44 = vld [vmem:[#allocation7 + $0x78] sm:$0xff]  ;;  %v300_v47 = vld [vmem:[#allocation7 + $0x60] sm:$0xff] }
  0x66   :  { %903 = vmatpush1.bf16.msra.mxu0 %v902_v26  ;;  %v910_v45 = vpack.c.bf16 %v298_v41, %v296_v40  ;;  %v912_v46 = vpack.c.bf16 %v303_v44, %v301_v43  ;;  %v302_v48 = vld [vmem:[#allocation7 + $0x70] sm:$0xff]  ;;  %v305_v49 = vld [vmem:[#allocation7 + $0x88] sm:$0xff]  ;;  %v307_v50 = vld [vmem:[#allocation7 + $0x98] sm:$0xff] }
  0x67   :  { %793 = vmatmul.mubr.msk.f32.vlgmr.msra.gmra.mrb[0].mxu1 %vm138_vm0, %v99_v21  ;;  %905 = vmatprep.subr.bf16.mxu0 %v904_v31  ;;  %v914_v51 = vpack.c.bf16 %v302_v48, %v300_v47  ;;  %v916_v52 = vpack.c.bf16 %v307_v50, %v305_v49  ;;  %v304_v53 = vld [vmem:[#allocation7 + $0x80] sm:$0xff]  ;;  %v306_v54 = vld [vmem:[#allocation7 + $0x90] sm:$0xff]  ;;  %v309_v55 = vld [vmem:[#allocation7 + $0xa8] sm:$0xff] }
  0x68   :  { %895 = vmatpush1.bf16.msra.mxu1 %v894_v30  ;;  %277 = vmatprep.mubr.f32.mxu1 %v1254_v0  ;;  %v311_v56 = vld [vmem:[#allocation7 + $0xb8] sm:$0xff]  ;;  %v918_v57 = vpack.c.bf16 %v306_v54, %v304_v53  ;;  %v308_v59 = vld [vmem:[#allocation7 + $0xa0] sm:$0xff]  ;;  %v310_v60 = vld [vmem:[#allocation7 + $0xb0] sm:$0xff] }
  0x69   :  { %897 = vmatprep.subr.bf16.mxu1 %v896_v35  ;;  %v920_v58 = vpack.c.bf16 %v311_v56, %v309_v55  ;;  %v313_v61 = vld [vmem:[#allocation7 + $0xc8] sm:$0xff]  ;;  %v315_v62 = vld [vmem:[#allocation7 + $0xd8] sm:$0xff]  ;;  %v922_v63 = vpack.c.bf16 %v310_v60, %v308_v59  ;;  %v312_v2 = vld [vmem:[#allocation7 + $0xc0] sm:$0xff] }
  0x6a   :  { %907 = vmatpush1.bf16.msra.mxu0 %v906_v38  ;;  %v924_v1 = vpack.c.bf16 %v315_v62, %v313_v61  ;;  %v314_v3 = vld [vmem:[#allocation7 + $0xd0] sm:$0xff]  ;;  %v317_v4 = vld [vmem:[#allocation7 + $0xe8] sm:$0xff]  ;;  %v319_v5 = vld [vmem:[#allocation7 + $0xf8] sm:$0xff] }
  0x6b   :  { %909 = vmatprep.subr.bf16.mxu0 %v908_v39  ;;  %v926_v6 = vpack.c.bf16 %v314_v3, %v312_v2  ;;  %v928_v7 = vpack.c.bf16 %v319_v5, %v317_v4  ;;  %v316_v8 = vld [vmem:[#allocation7 + $0xe0] sm:$0xff]  ;;  %v318_v9 = vld [vmem:[#allocation7 + $0xf0] sm:$0xff]  ;;  %v321_v10 = vld [vmem:[#allocation7 + $0x108] sm:$0xff] }
  0x6c   :  { %899 = vmatpush1.bf16.msra.mxu1 %v898_v42  ;;  %v323_v11 = vld [vmem:[#allocation7 + $0x118] sm:$0xff]  ;;  %v930_v12 = vpack.c.bf16 %v318_v9, %v316_v8  ;;  %v320_v14 = vld [vmem:[#allocation7 + $0x100] sm:$0xff]  ;;  %v322_v15 = vld [vmem:[#allocation7 + $0x110] sm:$0xff] }
  0x6d   :  { %v932_v13 = vpack.c.bf16 %v323_v11, %v321_v10  ;;  %v325_v16 = vld [vmem:[#allocation7 + $0x128] sm:$0xff]  ;;  %v327_v17 = vld [vmem:[#allocation7 + $0x138] sm:$0xff]  ;;  %v934_v18 = vpack.c.bf16 %v322_v15, %v320_v14  ;;  %v324_v20 = vld [vmem:[#allocation7 + $0x120] sm:$0xff] }
  0x6e   :  { %911 = vmatpush1.bf16.msra.mxu0 %v910_v45  ;;  %v936_v19 = vpack.c.bf16 %v327_v17, %v325_v16  ;;  %v329_v22 = vld [vmem:[#allocation7 + $0x148] sm:$0xff]  ;;  %v331_v23 = vld [vmem:[#allocation7 + $0x158] sm:$0xff]  ;;  %v328_v26 = vld [vmem:[#allocation7 + $0x140] sm:$0xff] }
  0x6f   :  { %794 = vmatmul.mubr.msk.f32.vlgmr.msra.gmra.mrb[2].mxu1 %vm138_vm0, %v99_v21  ;;  %913 = vmatprep.subr.bf16.mxu0 %v912_v46  ;;  %v326_v21 = vld [vmem:[#allocation7 + $0x130] sm:$0xff]  ;;  %v940_v25 = vpack.c.bf16 %v331_v23, %v329_v22  ;;  %v333_v28 = vld [vmem:[#allocation7 + $0x168] sm:$0xff]  ;;  %v335_v29 = vld [vmem:[#allocation7 + $0x178] sm:$0xff] }
  0x70   :  { %v938_v24 = vpack.c.bf16 %v326_v21, %v324_v20  ;;  %v330_v27 = vld [vmem:[#allocation7 + $0x150] sm:$0xff]  ;;  %v944_v31 = vpack.c.bf16 %v335_v29, %v333_v28  ;;  %v332_v32 = vld [vmem:[#allocation7 + $0x160] sm:$0xff]  ;;  %v337_v34 = vld [vmem:[#allocation7 + $0x188] sm:$0xff] }
  0x71   :  { %v942_v30 = vpack.c.bf16 %v330_v27, %v328_v26  ;;  %v334_v33 = vld [vmem:[#allocation7 + $0x170] sm:$0xff]  ;;  %v339_v35 = vld [vmem:[#allocation7 + $0x198] sm:$0xff]  ;;  %v336_v38 = vld [vmem:[#allocation7 + $0x180] sm:$0xff] }
  0x72   :  { %915 = vmatpush1.bf16.msra.mxu0 %v914_v51  ;;  %v946_v36 = vpack.c.bf16 %v334_v33, %v332_v32  ;;  %v948_v37 = vpack.c.bf16 %v339_v35, %v337_v34  ;;  %v338_v39 = vld [vmem:[#allocation7 + $0x190] sm:$0xff]  ;;  %v341_v40 = vld [vmem:[#allocation7 + $0x1a8] sm:$0xff]  ;;  %v343_v41 = vld [vmem:[#allocation7 + $0x1b8] sm:$0xff] }
  0x73   :  { %917 = vmatprep.subr.bf16.mxu0 %v916_v52  ;;  %v950_v42 = vpack.c.bf16 %v338_v39, %v336_v38  ;;  %v952_v43 = vpack.c.bf16 %v343_v41, %v341_v40  ;;  %v340_v44 = vld [vmem:[#allocation7 + $0x1a0] sm:$0xff]  ;;  %v342_v45 = vld [vmem:[#allocation7 + $0x1b0] sm:$0xff]  ;;  %v345_v46 = vld [vmem:[#allocation7 + $0x1c8] sm:$0xff]  ;;  %v118_v38 = vlaneseq }
  0x74   :  { %v347_v47 = vld [vmem:[#allocation7 + $0x1d8] sm:$0xff]  ;;  %v954_v48 = vpack.c.bf16 %v342_v45, %v340_v44  ;;  %v344_v50 = vld [vmem:[#allocation7 + $0x1c0] sm:$0xff]  ;;  %v346_v51 = vld [vmem:[#allocation7 + $0x1d0] sm:$0xff] }
  0x75   :  { %v956_v49 = vpack.c.bf16 %v347_v47, %v345_v46  ;;  %v958_v52 = vpack.c.bf16 %v346_v51, %v344_v50  ;;  %v349_v53 = vld [vmem:[#allocation7 + $0x1e8] sm:$0xff]  ;;  %v351_v54 = vld [vmem:[#allocation7 + $0x1f8] sm:$0xff]  ;;  %v348_v56 = vld [vmem:[#allocation7 + $0x1e0] sm:$0xff]  ;;  %v1385_v39 = vshrl.u32 %v118_v38, 7 }
  0x76   :  { %919 = vmatpush1.bf16.msra.mxu0 %v918_v57  ;;  %v960_v55 = vpack.c.bf16 %v351_v54, %v349_v53  ;;  %v350_v57 = vld [vmem:[#allocation7 + $0x1f0] sm:$0xff]  ;;  %v353_v59 = vld [vmem:[#allocation7 + $0x208] sm:$0xff]  ;;  %v355_v60 = vld [vmem:[#allocation7 + $0x218] sm:$0xff] }
  0x77   :  { %921 = vmatprep.subr.bf16.mxu0 %v920_v58  ;;  %v962_v58 = vpack.c.bf16 %v350_v57, %v348_v56  ;;  %v964_v61 = vpack.c.bf16 %v355_v60, %v353_v59  ;;  %v588_v62 = vld [vmem:[#allocation8 + $0x80] sm:$0xff]  ;;  %v573_v3 = vld [vmem:[#allocation8 + $0x8] sm:$0xff]  ;;  %v590_v4 = vld [vmem:[#allocation8 + $0x90] sm:$0xff]  ;;  %v120_v40 = vsub.s32 0, %v1385_v39  ;;  %v132_v53 = vsub.s32 3, %v1385_v39 }
  0x78   :  { %v591_v5 = vld [vmem:[#allocation8 + $0x98] sm:$0xff]  ;;  %v574_v8 = vld [vmem:[#allocation8 + $0x10] sm:$0xff]  ;;  %v592_v10 = vld [vmem:[#allocation8 + $0xa0] sm:$0xff] }
  0x79   :  { %v575_v9 = vld [vmem:[#allocation8 + $0x18] sm:$0xff]  ;;  %v593_v11 = vld [vmem:[#allocation8 + $0xa8] sm:$0xff]  ;;  %v576_v14 = vld [vmem:[#allocation8 + $0x20] sm:$0xff] }
  0x7a   :  { %923 = vmatpush1.bf16.msra.mxu0 %v922_v63  ;;  %v589_v63 = vld [vmem:[#allocation8 + $0x88] sm:$0xff]  ;;  %v594_v16 = vld [vmem:[#allocation8 + $0xb0] sm:$0xff]  ;;  %v595_v17 = vld [vmem:[#allocation8 + $0xb8] sm:$0xff] }
  0x7b   :  { %925 = vmatprep.subr.bf16.mxu0 %v924_v1  ;;  %v572_v1 = vld [vmem:[#allocation8] sm:$0xff]  ;;  %v1028_v2 = vpack.c.bf16 %v589_v63, %v588_v62  ;;  %v577_v15 = vld [vmem:[#allocation8 + $0x28] sm:$0xff]  ;;  %v578_v20 = vld [vmem:[#allocation8 + $0x30] sm:$0xff] }
  0x7c   :  { %v579_v21 = vld [vmem:[#allocation8 + $0x38] sm:$0xff]  ;;  %v596_v22 = vld [vmem:[#allocation8 + $0xc0] sm:$0xff]  ;;  %v597_v23 = vld [vmem:[#allocation8 + $0xc8] sm:$0xff] }
  0x7d   :  { %1029 = vmatprep.subr.bf16.mxu1 %v1028_v2  ;;  %v580_v26 = vld [vmem:[#allocation8 + $0x40] sm:$0xff]  ;;  %v581_v27 = vld [vmem:[#allocation8 + $0x48] sm:$0xff]  ;;  %v598_v28 = vld [vmem:[#allocation8 + $0xd0] sm:$0xff] }
  0x7e   :  { %927 = vmatpush1.bf16.msra.mxu0 %v926_v6  ;;  %v1030_v6 = vpack.c.bf16 %v573_v3, %v572_v1  ;;  %v599_v29 = vld [vmem:[#allocation8 + $0xd8] sm:$0xff]  ;;  %v582_v32 = vld [vmem:[#allocation8 + $0x50] sm:$0xff]  ;;  %v600_v34 = vld [vmem:[#allocation8 + $0xe0] sm:$0xff] }
  0x7f   :  { %929 = vmatprep.subr.bf16.mxu0 %v928_v7  ;;  %v1032_v7 = vpack.c.bf16 %v591_v5, %v590_v4  ;;  %v583_v33 = vld [vmem:[#allocation8 + $0x58] sm:$0xff]  ;;  %v601_v35 = vld [vmem:[#allocation8 + $0xe8] sm:$0xff]  ;;  %v358_v59 = vld [vmem:[#allocation7 + $0x230] sm:$0xff] }
  0x80   :  { %1031 = vmatpush3.bf16.msra.mxu1 %v1030_v6  ;;  %v1391_v41 = vld [vmem:[%s1435_s2] sm:$0xf]  ;;  %v357_v51 = vld [vmem:[#allocation7 + $0x228] sm:$0xff]  ;;  %v360_v3 = vld [vmem:[#allocation7 + $0x240] sm:$0xff] }
  0x81   :  { %1033 = vmatprep.subr.bf16.mxu1 %v1032_v7  ;;  %v361_v60 = vld [vmem:[#allocation7 + $0x248] sm:$0xff]  ;;  %v133_v62 = vrot.slane %v1391_v41, %v132_v53  ;;  %v362_v4 = vld [vmem:[#allocation7 + $0x250] sm:$0xff]  ;;  %v367_v7 = vld [vmem:[#allocation7 + $0x278] sm:$0xff] }
  0x82   :  { %931 = vmatpush1.bf16.msra.mxu0 %v930_v12  ;;  %v1034_v12 = vpack.c.bf16 %v575_v9, %v574_v8  ;;  %v365_v6 = vld [vmem:[#allocation7 + $0x268] sm:$0xff]  ;;  %v974_v9 = vpack.c.bf16 %v362_v4, %v360_v3  ;;  %v390_v53 = vld [vmem:[#allocation7 + $0x330] sm:$0xff] }
  0x83   :  { %933 = vmatprep.subr.bf16.mxu0 %v932_v13  ;;  %v1036_v13 = vpack.c.bf16 %v593_v11, %v592_v10  ;;  %v976_v11 = vpack.c.bf16 %v367_v7, %v365_v6  ;;  %v385_v38 = vld [vmem:[#allocation7 + $0x308] sm:$0xff]  ;;  %v398_v3 = vld [vmem:[#allocation7 + $0x370] sm:$0xff] }
  0x84   :  { %1035 = vmatpush3.bf16.msra.mxu1 %v1034_v12  ;;  %v364_v12 = vld [vmem:[#allocation7 + $0x260] sm:$0xff]  ;;  %v401_v4 = vld [vmem:[#allocation7 + $0x388] sm:$0xff] }
  0x85   :  { %1037 = vmatprep.subr.bf16.mxu1 %v1036_v13  ;;  %v366_v13 = vld [vmem:[#allocation7 + $0x270] sm:$0xff] }
  0x86   :  { %935 = vmatpush1.bf16.msra.mxu0 %v934_v18  ;;  %v1038_v18 = vpack.c.bf16 %v577_v15, %v576_v14  ;;  %v369_v14 = vld [vmem:[#allocation7 + $0x288] sm:$0xff]  ;;  %v371_v15 = vld [vmem:[#allocation7 + $0x298] sm:$0xff] }
  0x87   :  { %937 = vmatprep.subr.bf16.mxu0 %v936_v19  ;;  %v1040_v19 = vpack.c.bf16 %v595_v17, %v594_v16  ;;  %v978_v16 = vpack.c.bf16 %v366_v13, %v364_v12  ;;  %v980_v17 = vpack.c.bf16 %v371_v15, %v369_v14  ;;  %v404_v14 = vld [vmem:[#allocation7 + $0x3a0] sm:$0xff]  ;;  %v406_v15 = vld [vmem:[#allocation7 + $0x3b0] sm:$0xff] }
  0x88   :  { %1039 = vmatpush3.bf16.msra.mxu1 %v1038_v18  ;;  %v368_v18 = vld [vmem:[#allocation7 + $0x280] sm:$0xff] }
  0x89   :  { %1041 = vmatprep.subr.bf16.mxu1 %v1040_v19  ;;  %v370_v19 = vld [vmem:[#allocation7 + $0x290] sm:$0xff] }
  0x8a   :  { %939 = vmatpush1.bf16.msra.mxu0 %v938_v24  ;;  %v1042_v24 = vpack.c.bf16 %v579_v21, %v578_v20  ;;  %v373_v20 = vld [vmem:[#allocation7 + $0x2a8] sm:$0xff]  ;;  %v375_v21 = vld [vmem:[#allocation7 + $0x2b8] sm:$0xff] }
  0x8b   :  { %941 = vmatprep.subr.bf16.mxu0 %v940_v25  ;;  %v1044_v25 = vpack.c.bf16 %v597_v23, %v596_v22  ;;  %v982_v22 = vpack.c.bf16 %v370_v19, %v368_v18  ;;  %v984_v23 = vpack.c.bf16 %v375_v21, %v373_v20  ;;  %v1018_v18 = vpack.c.bf16 %v406_v15, %v404_v14  ;;  %v408_v21 = vld [vmem:[#allocation7 + $0x3c0] sm:$0xff]  ;;  %v795_v14 = vld [vmem:[%s1439_s6] ss:$0 sm:$0xff] }
  0x8c   :  { %1043 = vmatpush3.bf16.msra.mxu1 %v1042_v24  ;;  %v372_v24 = vld [vmem:[#allocation7 + $0x2a0] sm:$0xff]  ;;  %v128_v19 = vsub.s32 2, %v1385_v39 }
  0x8d   :  { %1045 = vmatprep.subr.bf16.mxu1 %v1044_v25  ;;  %v374_v25 = vld [vmem:[#allocation7 + $0x2b0] sm:$0xff] }
  0x8e   :  { %943 = vmatpush1.bf16.msra.mxu0 %v942_v30  ;;  %v1046_v30 = vpack.c.bf16 %v581_v27, %v580_v26  ;;  %v377_v26 = vld [vmem:[#allocation7 + $0x2c8] sm:$0xff]  ;;  %v379_v27 = vld [vmem:[#allocation7 + $0x2d8] sm:$0xff] }
  0x8f   :  { %945 = vmatprep.subr.bf16.mxu0 %v944_v31  ;;  %v1048_v31 = vpack.c.bf16 %v599_v29, %v598_v28  ;;  %v986_v28 = vpack.c.bf16 %v374_v25, %v372_v24  ;;  %v988_v29 = vpack.c.bf16 %v379_v27, %v377_v26  ;;  %v415_v24 = vld [vmem:[#allocation7 + $0x3f8] sm:$0xff]  ;;  %v129_v26 = vrot.slane %v1391_v41, %v128_v19 }
  0x90   :  { %1047 = vmatpush3.bf16.msra.mxu1 %v1046_v30  ;;  %v376_v30 = vld [vmem:[#allocation7 + $0x2c0] sm:$0xff]  ;;  %v796_v19 = vld [vmem:[%s1441_s8] ss:$0 sm:$0xff] }
  0x91   :  { %1049 = vmatprep.subr.bf16.mxu1 %v1048_v31  ;;  %v378_v31 = vld [vmem:[#allocation7 + $0x2d0] sm:$0xff] }
  0x92   :  { %947 = vmatpush1.bf16.msra.mxu0 %v946_v36  ;;  %v1050_v36 = vpack.c.bf16 %v583_v33, %v582_v32  ;;  %v381_v32 = vld [vmem:[#allocation7 + $0x2e8] sm:$0xff]  ;;  %v383_v33 = vld [vmem:[#allocation7 + $0x2f8] sm:$0xff] }
  0x93   :  { %949 = vmatprep.subr.bf16.mxu0 %v948_v37  ;;  %v1052_v37 = vpack.c.bf16 %v601_v35, %v600_v34  ;;  %v990_v34 = vpack.c.bf16 %v378_v31, %v376_v30  ;;  %v992_v35 = vpack.c.bf16 %v383_v33, %v381_v32  ;;  %v584_v33 = vld [vmem:[#allocation8 + $0x60] sm:$0xff] }
  0x94   :  { %1051 = vmatpush3.bf16.msra.mxu1 %v1050_v36  ;;  %v380_v36 = vld [vmem:[#allocation7 + $0x2e0] sm:$0xff] }
  0x95   :  { %1053 = vmatprep.subr.bf16.mxu1 %v1052_v37  ;;  %v382_v37 = vld [vmem:[#allocation7 + $0x2f0] sm:$0xff] }
  0x96   :  { %951 = vmatpush1.bf16.msra.mxu0 %v950_v42  ;;  %v124_v42 = vsub.s32 1, %v1385_v39 }
  0x97   :  { %953 = vmatprep.subr.bf16.mxu0 %v952_v43  ;;  %v121_v43 = vrot.slane %v1391_v41, %v120_v40 }
  0x98   :  { %v125_v44 = vrot.slane %v1391_v41, %v124_v42  ;;  %v586_v41 = vld [vmem:[#allocation8 + $0x70] sm:$0xff] }
  0x9a   :  { %955 = vmatpush1.bf16.msra.mxu0 %v954_v48  ;;  %v352_v48 = vld [vmem:[#allocation7 + $0x200] sm:$0xff] }
  0x9b   :  { %957 = vmatprep.subr.bf16.mxu0 %v956_v49  ;;  %v354_v49 = vld [vmem:[#allocation7 + $0x210] sm:$0xff] }
  0x9e   :  { %959 = vmatpush1.bf16.msra.mxu0 %v958_v52  ;;  %v359_v52 = vld [vmem:[#allocation7 + $0x238] sm:$0xff] }
  0x9f   :  { %961 = vmatprep.subr.bf16.mxu0 %v960_v55  ;;  %v966_v55 = vpack.c.bf16 %v354_v49, %v352_v48  ;;  %v968_v57 = vpack.c.bf16 %v359_v52, %v357_v51  ;;  %v389_v48 = vld [vmem:[#allocation7 + $0x328] sm:$0xff]  ;;  %v391_v49 = vld [vmem:[#allocation7 + $0x338] sm:$0xff]  ;;  %v388_v52 = vld [vmem:[#allocation7 + $0x320] sm:$0xff] }
  0xa0   :  { %v1000_v51 = vpack.c.bf16 %v391_v49, %v389_v48 }
  0xa2   :  { %963 = vmatpush1.bf16.msra.mxu0 %v962_v58  ;;  %v356_v58 = vld [vmem:[#allocation7 + $0x220] sm:$0xff] }
  0xa3   :  { %965 = vmatprep.subr.bf16.mxu0 %v964_v61  ;;  %v363_v61 = vld [vmem:[#allocation7 + $0x258] sm:$0xff]  ;;  %v970_v63 = vpack.c.bf16 %v358_v59, %v356_v58  ;;  %v392_v58 = vld [vmem:[#allocation7 + $0x340] sm:$0xff]  ;;  %v394_v59 = vld [vmem:[#allocation7 + $0x350] sm:$0xff] }
  0xa4   :  { %v972_v2 = vpack.c.bf16 %v363_v61, %v361_v60  ;;  %v397_v60 = vld [vmem:[#allocation7 + $0x368] sm:$0xff]  ;;  %v399_v61 = vld [vmem:[#allocation7 + $0x378] sm:$0xff] }
 0x13a   :  { %v208_v45 = vpop.f32.mrb[0].mxu1 }
 0x13b   :  { %v209_v46 = vadd.f32 %v208_v45, %v121_v43  ;;  %v210_v47 = vpop.f32.mrb[1].mxu1  ;;  %v387_v43 = vld [vmem:[#allocation7 + $0x318] sm:$0xff] }
 0x13c   :  { %v211_v50 = vadd.f32 %v210_v47, %v125_v44  ;;  %v994_v44 = vpack.c.bf16 %v382_v37, %v380_v36  ;;  %v996_v45 = vpack.c.bf16 %v387_v43, %v385_v38  ;;  %v386_v47 = vld [vmem:[#allocation7 + $0x310] sm:$0xff]  ;;  %v603_v37 = vld [vmem:[#allocation8 + $0xf8] sm:$0xff] }
 0x13d   :  { %v284_v56 = vmax.f32 %v209_v46, 0.0  ;;  %v384_v46 = vld [vmem:[#allocation7 + $0x300] sm:$0xff]  ;;  %v602_v36 = vld [vmem:[#allocation8 + $0xf0] sm:$0xff]  ;;  %v587_v43 = vld [vmem:[#allocation8 + $0x78] sm:$0xff] }
 0x13e   :  { %v285_v54 = vmax.f32 %v211_v50, 0.0  ;;  %v998_v50 = vpack.c.bf16 %v386_v47, %v384_v46  ;;  %v1056_v38 = vpack.c.bf16 %v603_v37, %v602_v36 }
 0x140   :  { %492 = vmatprep.mubr.f32.mxu0 %v285_v54  ;;  %v393_v54 = vld [vmem:[#allocation7 + $0x348] sm:$0xff] }
 0x141   :  { %493 = vmatmul.mubr.f32.vlgmr.msra.gmra.mrb[0].mxu0 %v284_v56  ;;  %v1002_v56 = vpack.c.bf16 %v390_v53, %v388_v52  ;;  %v683_v52 = vld [vmem:[#allocation10 + $0x8] sm:$0xff] }
 0x142   :  { %967 = vmatpush1.bf16.msra.mxu0 %v966_v55  ;;  %v1402_v1 = vpop.f32.mrb[2].mxu1  ;;  %v395_v55 = vld [vmem:[#allocation7 + $0x358] sm:$0xff] }
 0x143   :  { %969 = vmatprep.subr.bf16.mxu0 %v968_v57  ;;  %v281_v5 = vpop.f32.mrb[3].mxu1  ;;  %v1004_v57 = vpack.c.bf16 %v395_v55, %v393_v54  ;;  %v280_v31 = vadd.f32 %v1402_v1, %v129_v26  ;;  %v416_v1 = vld [vmem:[%s1437_s4] sm:$0x3] }
 0x144   :  { %v282_v8 = vadd.f32 %v281_v5, %v133_v62  ;;  %v1006_v62 = vpack.c.bf16 %v394_v59, %v392_v58  ;;  %v403_v5 = vld [vmem:[#allocation7 + $0x398] sm:$0xff]  ;;  %v421_v46 = vrot.slane %v416_v1, %v120_v40  ;;  %v425_v47 = vrot.slane %v416_v1, %v124_v42  ;;  %v686_v40 = vld [vmem:[#allocation10 + $0x20] sm:$0xff]  ;;  %v688_v42 = vld [vmem:[#allocation10 + $0x30] sm:$0xff] }
 0x145   :  { %v1012_v7 = vpack.c.bf16 %v403_v5, %v401_v4  ;;  %v286_v32 = vmax.f32 %v280_v31, 0.0  ;;  %v685_v58 = vld [vmem:[#allocation10 + $0x18] sm:$0xff]  ;;  %v692_v4 = vld [vmem:[#allocation10 + $0x50] sm:$0xff] }
 0x146   :  { %971 = vmatpush1.bf16.msra.mxu0 %v970_v63  ;;  %v287_v10 = vmax.f32 %v282_v8, 0.0  ;;  %v1008_v63 = vpack.c.bf16 %v399_v61, %v397_v60  ;;  %v400_v8 = vld [vmem:[#allocation7 + $0x380] sm:$0xff]  ;;  %v687_v60 = vld [vmem:[#allocation10 + $0x28] sm:$0xff]  ;;  %v689_v61 = vld [vmem:[#allocation10 + $0x38] sm:$0xff] }
 0x147   :  { %973 = vmatprep.subr.bf16.mxu0 %v972_v2  ;;  %v396_v2 = vld [vmem:[#allocation7 + $0x360] sm:$0xff]  ;;  %v1067_v39 = vpack.c.bf16 %v687_v60, %v686_v40  ;;  %v693_v5 = vld [vmem:[#allocation10 + $0x58] sm:$0xff] }
 0x148   :  { %563 = vmatprep.mubr.f32.mxu0 %v287_v10  ;;  %v1010_v6 = vpack.c.bf16 %v398_v3, %v396_v2  ;;  %v405_v10 = vld [vmem:[#allocation7 + $0x3a8] sm:$0xff] }
 0x149   :  { %v691_v2 = vld [vmem:[#allocation10 + $0x48] sm:$0xff] }
 0x14a   :  { %975 = vmatpush1.bf16.msra.mxu0 %v974_v9  ;;  %v402_v9 = vld [vmem:[#allocation7 + $0x390] sm:$0xff] }
 0x14b   :  { %977 = vmatprep.subr.bf16.mxu0 %v976_v11  ;;  %v407_v11 = vld [vmem:[#allocation7 + $0x3b8] sm:$0xff]  ;;  %v1014_v12 = vpack.c.bf16 %v402_v9, %v400_v8  ;;  %v695_v8 = vld [vmem:[#allocation10 + $0x68] sm:$0xff] }
 0x14c   :  { %v1016_v13 = vpack.c.bf16 %v407_v11, %v405_v10  ;;  %v696_v10 = vld [vmem:[#allocation10 + $0x70] sm:$0xff]  ;;  %v697_v11 = vld [vmem:[#allocation10 + $0x78] sm:$0xff] }
 0x14e   :  { %979 = vmatpush1.bf16.msra.mxu0 %v978_v16  ;;  %v409_v16 = vld [vmem:[#allocation7 + $0x3c8] sm:$0xff] }
 0x14f   :  { %981 = vmatprep.subr.bf16.mxu0 %v980_v17  ;;  %v411_v17 = vld [vmem:[#allocation7 + $0x3d8] sm:$0xff] }
 0x150   :  { %v1020_v20 = vpack.c.bf16 %v411_v17, %v409_v16 }
 0x152   :  { %983 = vmatpush1.bf16.msra.mxu0 %v982_v22  ;;  %v410_v22 = vld [vmem:[#allocation7 + $0x3d0] sm:$0xff] }
 0x153   :  { %985 = vmatprep.subr.bf16.mxu0 %v984_v23  ;;  %v413_v23 = vld [vmem:[#allocation7 + $0x3e8] sm:$0xff]  ;;  %v1022_v25 = vpack.c.bf16 %v410_v22, %v408_v21 }
 0x154   :  { %v1024_v27 = vpack.c.bf16 %v415_v24, %v413_v23 }
 0x156   :  { %987 = vmatpush1.bf16.msra.mxu0 %v986_v28  ;;  %v412_v28 = vld [vmem:[#allocation7 + $0x3e0] sm:$0xff] }
 0x157   :  { %989 = vmatprep.subr.bf16.mxu0 %v988_v29  ;;  %v414_v29 = vld [vmem:[#allocation7 + $0x3f0] sm:$0xff] }
 0x158   :  { %v1026_v30 = vpack.c.bf16 %v414_v29, %v412_v28 }
 0x15a   :  { %991 = vmatpush1.bf16.msra.mxu0 %v990_v34  ;;  %v585_v34 = vld [vmem:[#allocation8 + $0x68] sm:$0xff] }
 0x15b   :  { %993 = vmatprep.subr.bf16.mxu0 %v992_v35  ;;  %v1054_v35 = vpack.c.bf16 %v585_v34, %v584_v33 }
 0x15d   :  { %1055 = vmatpush3.bf16.msra.mxu1 %v1054_v35 }
 0x15e   :  { %995 = vmatpush1.bf16.msra.mxu0 %v994_v44  ;;  %v1058_v44 = vpack.c.bf16 %v587_v43, %v586_v41  ;;  %1057 = vmatprep.subr.bf16.mxu1 %v1056_v38 }
 0x15f   :  { %997 = vmatprep.subr.bf16.mxu0 %v996_v45  ;;  %v1255_v45 = vmov 0.0|0.0  }
 0x161   :  { %1059 = vmatpush3.bf16.msra.mxu1 %v1058_v44 }
 0x162   :  { %999 = vmatpush1.bf16.msra.mxu0 %v998_v50  ;;  %1060 = vmatprep.subr.bf16.mxu1 %v1255_v45 }
 0x163   :  { %1001 = vmatprep.subr.bf16.mxu0 %v1000_v51  ;;  %v682_v51 = vld [vmem:[#allocation10] sm:$0xff] }
 0x164   :  { %v1061_v55 = vpack.c.bf16 %v683_v52, %v682_v51 }
 0x166   :  { %1003 = vmatpush1.bf16.msra.mxu0 %v1002_v56 }
 0x167   :  { %1005 = vmatprep.subr.bf16.mxu0 %v1004_v57  ;;  %v684_v57 = vld [vmem:[#allocation10 + $0x10] sm:$0xff] }
 0x168   :  { %v1064_v59 = vpack.c.bf16 %v685_v58, %v684_v57 }
 0x16a   :  { %1007 = vmatpush1.bf16.msra.mxu0 %v1006_v62  ;;  %v1070_v62 = vpack.c.bf16 %v689_v61, %v688_v42 }
 0x16b   :  { %1009 = vmatprep.subr.bf16.mxu0 %v1008_v63  ;;  %v690_v63 = vld [vmem:[#allocation10 + $0x40] sm:$0xff] }
 0x16c   :  { %v1073_v3 = vpack.c.bf16 %v691_v2, %v690_v63 }
 0x16e   :  { %1011 = vmatpush1.bf16.msra.mxu0 %v1010_v6  ;;  %v1076_v6 = vpack.c.bf16 %v693_v5, %v692_v4 }
 0x16f   :  { %1013 = vmatprep.subr.bf16.mxu0 %v1012_v7  ;;  %v694_v7 = vld [vmem:[#allocation10 + $0x60] sm:$0xff] }
 0x170   :  { %v1079_v9 = vpack.c.bf16 %v695_v8, %v694_v7 }
 0x172   :  { %1015 = vmatpush1.bf16.msra.mxu0 %v1014_v12  ;;  %v1082_v12 = vpack.c.bf16 %v697_v11, %v696_v10 }
 0x173   :  { %1017 = vmatprep.subr.bf16.mxu0 %v1016_v13 }
 0x176   :  { %1019 = vmatpush1.bf16.msra.mxu0 %v1018_v18 }
 0x177   :  { %1021 = vmatprep.subr.bf16.mxu0 %v1020_v20 }
 0x17a   :  { %1023 = vmatpush1.bf16.msra.mxu0 %v1022_v25 }
 0x17b   :  { %1025 = vmatprep.subr.bf16.mxu0 %v1024_v27 }
 0x17e   :  { %1027 = vmatpush1.bf16.msra.mxu0 %v1026_v30 }
 0x181   :  { %564 = vmatmul.mubr.f32.vlgmr.msra.gmra.mrb[0].mxu0 %v286_v32 }
 0x254   :  { %v565_v48 = vpop.f32.mrb[0].mxu0 }
 0x255   :  { %v1084_v49 = vadd.f32 %v565_v48, %v421_v46  ;;  %v567_v50 = vpop.f32.mrb[1].mxu0 }
 0x256   :  { %v1085_v53 = vadd.f32 %v567_v50, %v425_v47 }
 0x257   :  { %v570_v56 = vmax.f32 %v1084_v49, 0.0 }
 0x258   :  { %v571_v54 = vmax.f32 %v1085_v53, 0.0 }
 0x25a   :  { %675 = vmatprep.mubr.f32.mxu1 %v571_v54 }
 0x25b   :  { %676 = vmatmul.mubr.f32.vlgmr.msra.gmra.mrb[4].mxu1 %v570_v56 }
 0x25c   :  { %1062 = vmatpush3.bf16.msra.mxu1 %v1061_v55  ;;  %881 = vmatprep.mubr.msk.f32.mxu1 %vm1256_vm1, %v1254_v0 }
 0x25d   :  { %1063 = vmatprep.subr.bf16.mxu1 %v1255_v45 }
 0x260   :  { %1065 = vmatpush3.bf16.msra.mxu1 %v1064_v59 }
 0x261   :  { %1066 = vmatprep.subr.bf16.mxu1 %v1255_v45 }
 0x264   :  { %1068 = vmatpush3.bf16.msra.mxu1 %v1067_v39 }
 0x265   :  { %1069 = vmatprep.subr.bf16.mxu1 %v1255_v45 }
 0x268   :  { %1071 = vmatpush3.bf16.msra.mxu1 %v1070_v62 }
 0x269   :  { %1072 = vmatprep.subr.bf16.mxu1 %v1255_v45 }
 0x26c   :  { %1074 = vmatpush3.bf16.msra.mxu1 %v1073_v3 }
 0x26d   :  { %1075 = vmatprep.subr.bf16.mxu1 %v1255_v45 }
 0x270   :  { %1077 = vmatpush3.bf16.msra.mxu1 %v1076_v6 }
 0x271   :  { %1078 = vmatprep.subr.bf16.mxu1 %v1255_v45 }
 0x274   :  { %1080 = vmatpush3.bf16.msra.mxu1 %v1079_v9 }
 0x275   :  { %1081 = vmatprep.subr.bf16.mxu1 %v1255_v45 }
 0x278   :  { %1083 = vmatpush3.bf16.msra.mxu1 %v1082_v12 }
 0x32e   :  { %v829_v13 = vpop.f32.mrb[4].mxu1 }
 0x32f   :  { %v830_v15 = vpop.f32.mrb[5].mxu1 }
 0x330   :  { %v831_v16 = vadd.f32 %v830_v15, %v829_v13 }
 0x332   :  { %v678_v17 = vadd.f32 %v831_v16, %v795_v14 }
 0x334   :  { %v681_v18 = vmax.f32 %v678_v17, 0.0 }
 0x336   :  { %882 = vmatmul.mubr.f32.vlgmr.msra.gmra.mrb[6].mxu1 %v681_v18 }
 0x409   :  { %v771_v20 = vpop.f32.mrb[6].mxu1 }
 0x40a   :  { %v772_v21 = vadd.f32 %v796_v19, %v771_v20  ;;  %v883_v22 = vpop.f32.mrb[7].mxu1 }
 0x40c   :  { %775 = vst [vmem:[#allocation11] sm:$0xff] %v772_v21 }
 0x40d   :  { %1224 = shalt.err (!%p1221_p2)
}
 0x40e   :  { %s1225_s0 = scalar_lea.hbm %s1442_s9, 128 }
 0x40f   :  { %p1226_p3 = scmp.ne.s32.totalorder %s1442_s9, %s1225_s0  ;;  %p1229_p4 = scmp.lt.u32.totalorder %s1225_s0, %s1442_s9 }
 0x411   :  { %p1231_p5 = pnand %p1229_p4, %p1226_p3 }
 0x413   :  { %1234 = shalt.err (!%p1231_p5)
}
 0x414   :  { %785 = dma.vmem_to_hbm [thread:$0]  %s783_s13, 128, %s1442_s9, [#allocation4]  }
 0x415   :  { %1241 = dma.done.wait [#allocation4], 128  }
 0x416   :  { %1242 = vsyncadd [#allocation4], 4294967168 }
 0x417   :  { %789 = vsyncpa [#allocation3], 1 }
 0x418   :  { %790 = vsyncpa [#allocation6], 1 }
 0x419   :  { %791 = vsyncpa [#allocation9], 1 }
 0x41a   :  { %792 = vsyncpa [#allocation4], 1 }

</bundles_post_ra>
